<compile_context>
chip_gen: v6e
topology: v6e:2x2x1
jax: 0.10.0
libtpu: 0.0.40
codegen_flags: <defaults>
</compile_context>

<pallas_src>
import functools

import jax
import jax.numpy as jnp
from jax.experimental import pallas as pl
from jax.experimental.pallas import tpu as pltpu

EPS = 1e-12  # matches l2normalize(v, eps=1e-12)


# ---------------------------------------------------------------------------
# Kernel 1: power iteration + sigma.  All math stays in f32 (v5e has no bf16
# VPU/EUP and sigma accuracy scales the whole output).
#   v     = l2norm(W^T u)
#   u_new = l2norm(W v)
#   sigma = u_new . (W v)          ->  emit scale = 1/sigma (no weight output)
# ---------------------------------------------------------------------------
def sigma_uv_kernel(w_ref, u_ref, scale_ref, u_out_ref, v_out_ref):
    w = w_ref[...]                                   # (Cout, K) f32
    u = u_ref[...]                                   # (1, Cout)

    v = jnp.dot(u, w, preferred_element_type=jnp.float32)            # (1, K)
    v = v * (1.0 / (jnp.sqrt(jnp.sum(v * v)) + EPS))

    u_new = jax.lax.dot_general(v, w, (((1,), (1,)), ((), ())),
                                preferred_element_type=jnp.float32)   # (1, Cout)
    u_new = u_new * (1.0 / (jnp.sqrt(jnp.sum(u_new * u_new)) + EPS))

    sigma = jnp.sum(jnp.dot(u_new, w, preferred_element_type=jnp.float32) * v)

    scale_ref[...] = (1.0 / sigma).reshape(1, 1)     # only a scalar goes to HBM
    u_out_ref[...] = u_new
    v_out_ref[...] = v


def spectral_scale(w_flat, u_row):
    Cout, K = w_flat.shape
    vmem = lambda: pl.BlockSpec(memory_space=pltpu.MemorySpace.VMEM)
    return pl.pallas_call(
        sigma_uv_kernel,
        out_shape=(
            jax.ShapeDtypeStruct((1, 1), jnp.float32),      # 1/sigma
            jax.ShapeDtypeStruct((1, Cout), jnp.float32),   # updated u
            jax.ShapeDtypeStruct((1, K), jnp.float32),      # updated v
        ),
        in_specs=[vmem(), vmem()],
        out_specs=(vmem(), vmem(), vmem()),
    )(w_flat, u_row)


# ---------------------------------------------------------------------------
# Kernel 2: implicit-im2col conv, sigma scale + bias fused into the epilogue.
#   acc(Cout, cols) = sum_taps  W_tap(Cout, Cin) @ x_flat[:, off_tap : off_tap+cols]
#   out             = acc * (1/sigma) + bias
# ---------------------------------------------------------------------------
def conv_taps_kernel(scale_ref, w_ref, b_ref, x_ref, o_ref, *, taps, wp, cols):
    # scale_ref: (1,1) f32 SMEM     w_ref: (KH*KW, Cout, Cin) bf16 (resident)
    # b_ref: (Cout,1) f32 (resident) x_ref: (1, Cin, Hp*Wp) bf16
    # o_ref: (1, Cout, cols) f32
    x = x_ref[0]                                         # (Cin, Hp*Wp) bf16
    cout = w_ref.shape[1]
    acc = jnp.zeros((cout, cols), jnp.float32)
    for t, (dy, dx) in enumerate(taps):                  # 9 static lane-shifted slices
        off = dy * wp + dx
        acc = acc + jnp.dot(w_ref[t], x[:, off:off + cols],
                            preferred_element_type=jnp.float32)
    scale = scale_ref[0, 0]                              # 1/sigma (SMEM scalar)
    o_ref[0] = (acc * scale + b_ref[...]).astype(o_ref.dtype)


def sn_conv2d_forward(x, w_bar, bias, u, v):
    """Forward of SpectralNorm(nn.Conv2d(Cin, Cout, k, stride=1, padding=k//2))."""
    del v  # with power_iterations=1 the stored v is overwritten before use
    N, Cin, H, W = x.shape
    Cout, _, KH, KW = w_bar.shape
    K = Cin * KH * KW
    assert KH % 2 == 1 and KW % 2 == 1  # TODO(synk): only stride=1 / 'same' / odd k

    # --- spectral normalization scalar (Pallas kernel 1, f32) ---
    w_flat = w_bar.reshape(Cout, K).astype(jnp.float32)
    scale, u_new, v_new = spectral_scale(
        w_flat, u.reshape(1, Cout).astype(jnp.float32))

    # --- glue: zero-pad and flatten spatial dims (cast to bf16 while padding) ---
    # Extra bottom rows keep every tap's flat slice in bounds.
    ph, pw = KH // 2, KW // 2
    Hp, Wp = H + 2 * ph + 1, W + 2 * pw
    x_pad = jnp.pad(x.astype(jnp.bfloat16),
                    ((0, 0), (0, 0), (ph, ph + 1), (pw, pw)))
    x_flat = x_pad.reshape(N, Cin, Hp * Wp)

    # Weight regrouped per tap (tiny): (KH*KW, Cout, Cin), bf16 MXU input.
    w_taps = jnp.transpose(w_bar, (2, 3, 0, 1)).reshape(KH * KW, Cout, Cin)
    w_taps = w_taps.astype(jnp.bfloat16)
    bias_col = bias.reshape(Cout, 1).astype(jnp.float32)

    cols = H * Wp                     # lane-dense column axis (padded row stride)
    taps = tuple((dy, dx) for dy in range(KH) for dx in range(KW))
    kernel = functools.partial(conv_taps_kernel, taps=taps, wp=Wp, cols=cols)

    out_flat = pl.pallas_call(
        kernel,
        out_shape=jax.ShapeDtypeStruct((N, Cout, cols), jnp.float32),
        grid=(N,),
        in_specs=[
            pl.BlockSpec(memory_space=pltpu.MemorySpace.SMEM),         # 1/sigma
            pl.BlockSpec((KH * KW, Cout, Cin), lambda n: (0, 0, 0)),   # weight (resident)
            pl.BlockSpec((Cout, 1), lambda n: (0, 0)),                 # bias   (resident)
            pl.BlockSpec((1, Cin, Hp * Wp), lambda n: (n, 0, 0)),      # activations
        ],
        out_specs=pl.BlockSpec((1, Cout, cols), lambda n: (n, 0, 0)),
        compiler_params=pltpu.CompilerParams(
            dimension_semantics=("parallel",)),      # v7x: 2 TCs split the batch
    )(scale, w_taps, bias_col, x_flat)

    # --- glue: drop padded columns (w >= W) and restore NCHW ---
    out = out_flat.reshape(N, Cout, H, Wp)[..., :W]
    return out, u_new.reshape(-1), v_new.reshape(-1)


# ---------------------------------------------------------------------------
# Pure-JAX reference (mirrors the PyTorch module, all f32)
# ---------------------------------------------------------------------------
def reference_forward(x, w_bar, bias, u, v):
    Cout, _, KH, KW = w_bar.shape
    w_flat = w_bar.reshape(Cout, -1)
    v1 = w_flat.T @ u
    v1 = v1 / (jnp.linalg.norm(v1) + EPS)
    u1 = w_flat @ v1
    u1 = u1 / (jnp.linalg.norm(u1) + EPS)
    sigma = u1 @ (w_flat @ v1)
    w_sn = w_bar / sigma
    out = jax.lax.conv_general_dilated(
        x, w_sn, window_strides=(1, 1),
        padding=((KH // 2, KH // 2), (KW // 2, KW // 2)),
        dimension_numbers=('NCHW', 'OIHW', 'NCHW'))
    return out + bias.reshape(1, -1, 1, 1), u1, v1


if __name__ == "__main__":
    key = jax.random.PRNGKey(0)
    k_x, k_w, k_b, k_u, k_v = jax.random.split(key, 5)

    N, Cin, H, W = 2, 4, 16, 16
    Cout, KH, KW = 8, 3, 3

    x = jax.random.normal(k_x, (N, Cin, H, W), dtype=jnp.float32)
    w_bar = 0.1 * jax.random.normal(k_w, (Cout, Cin, KH, KW), dtype=jnp.float32)
    bias = 0.1 * jax.random.normal(k_b, (Cout,), dtype=jnp.float32)

    # _make_params(): u, v ~ N(0,1) then l2-normalized
    u = jax.random.normal(k_u, (Cout,), dtype=jnp.float32)
    v = jax.random.normal(k_v, (Cin * KH * KW,), dtype=jnp.float32)
    u = u / (jnp.linalg.norm(u) + EPS)
    v = v / (jnp.linalg.norm(v) + EPS)

    out, u_new, v_new = sn_conv2d_forward(x, w_bar, bias, u, v)
    out = jax.block_until_ready(out)

    ref, u_ref, v_ref = reference_forward(x, w_bar, bias, u, v)
    assert bool(jnp.allclose(out, ref, atol=3e-2, rtol=3e-2)), "conv output mismatch"
    assert bool(jnp.allclose(u_new, u_ref, atol=2e-2, rtol=2e-2)), "u mismatch"
    assert bool(jnp.allclose(v_new, v_ref, atol=2e-2, rtol=2e-2)), "v mismatch"

    print("KERNEL_OK")
</pallas_src>

<mosaic_0001>
module attributes {stable_mosaic.version = 11 : i64} {
  func.func @sigma_uv_kernel(%arg0: memref<8x36xf32, #tpu.memory_space<vmem>>, %arg1: memref<1x8xf32, #tpu.memory_space<vmem>>, %arg2: memref<1x1xf32, #tpu.memory_space<vmem>>, %arg3: memref<1x8xf32, #tpu.memory_space<vmem>>, %arg4: memref<1x36xf32, #tpu.memory_space<vmem>>) attributes {dimension_semantics = [], scalar_prefetch = 0 : i64, scratch_operands = 0 : i64, tpu.core_type = #tpu.core_type<tc>} {
    %c0 = arith.constant 0 : index
    %c0_0 = arith.constant 0 : index
    %0 = vector.load %arg0[%c0, %c0_0] : memref<8x36xf32, #tpu.memory_space<vmem>>, vector<8x36xf32>
    %c0_1 = arith.constant 0 : index
    %c0_2 = arith.constant 0 : index
    %1 = vector.load %arg1[%c0_1, %c0_2] : memref<1x8xf32, #tpu.memory_space<vmem>>, vector<1x8xf32>
    %cst = arith.constant dense<0.000000e+00> : vector<1x36xf32>
    %2 = tpu.matmul %1, %0, %cst {dimension_numbers = #tpu.dot_dimension_numbers<[1], [0], [0], [1], [0, 0, 1, 1], [], []>} : vector<1x8xf32>, vector<8x36xf32>, vector<1x36xf32> -> vector<1x36xf32>
    %3 = arith.mulf %2, %2 : vector<1x36xf32>
    %4 = vector.shape_cast %3 : vector<1x36xf32> to vector<1x1x36xf32>
    %cst_3 = arith.constant dense<0.000000e+00> : vector<1xf32>
    %5 = vector.multi_reduction <add>, %4, %cst_3 [1, 2] : vector<1x1x36xf32> to vector<1xf32>
    %6 = vector.shape_cast %5 : vector<1xf32> to vector<1x1x1xf32>
    %7 = vector.extract %6[0, 0, 0] : f32 from vector<1x1x1xf32>
    %8 = math.sqrt %7 : f32
    %cst_4 = arith.constant 9.99999996E-13 : f32
    %9 = arith.addf %8, %cst_4 : f32
    %cst_5 = arith.constant 1.000000e+00 : f32
    %10 = arith.divf %cst_5, %9 : f32
    %11 = vector.broadcast %10 : f32 to vector<1x36xf32>
    %12 = arith.mulf %2, %11 : vector<1x36xf32>
    %cst_6 = arith.constant dense<0.000000e+00> : vector<1x8xf32>
    %13 = tpu.matmul %12, %0, %cst_6 {dimension_numbers = #tpu.dot_dimension_numbers<[1], [1], [0], [0], [0, 0, 1, 0], [], []>} : vector<1x36xf32>, vector<8x36xf32>, vector<1x8xf32> -> vector<1x8xf32>
    %14 = arith.mulf %13, %13 : vector<1x8xf32>
    %15 = vector.shape_cast %14 : vector<1x8xf32> to vector<1x1x8xf32>
    %cst_7 = arith.constant dense<0.000000e+00> : vector<1xf32>
    %16 = vector.multi_reduction <add>, %15, %cst_7 [1, 2] : vector<1x1x8xf32> to vector<1xf32>
    %17 = vector.shape_cast %16 : vector<1xf32> to vector<1x1x1xf32>
    %18 = vector.extract %17[0, 0, 0] : f32 from vector<1x1x1xf32>
    %19 = math.sqrt %18 : f32
    %cst_8 = arith.constant 9.99999996E-13 : f32
    %20 = arith.addf %19, %cst_8 : f32
    %cst_9 = arith.constant 1.000000e+00 : f32
    %21 = arith.divf %cst_9, %20 : f32
    %22 = vector.broadcast %21 : f32 to vector<1x8xf32>
    %23 = arith.mulf %13, %22 : vector<1x8xf32>
    %cst_10 = arith.constant dense<0.000000e+00> : vector<1x36xf32>
    %24 = tpu.matmul %23, %0, %cst_10 {dimension_numbers = #tpu.dot_dimension_numbers<[1], [0], [0], [1], [0, 0, 1, 1], [], []>} : vector<1x8xf32>, vector<8x36xf32>, vector<1x36xf32> -> vector<1x36xf32>
    %25 = arith.mulf %24, %12 : vector<1x36xf32>
    %26 = vector.shape_cast %25 : vector<1x36xf32> to vector<1x1x36xf32>
    %cst_11 = arith.constant dense<0.000000e+00> : vector<1xf32>
    %27 = vector.multi_reduction <add>, %26, %cst_11 [1, 2] : vector<1x1x36xf32> to vector<1xf32>
    %28 = vector.shape_cast %27 : vector<1xf32> to vector<1x1x1xf32>
    %29 = vector.extract %28[0, 0, 0] : f32 from vector<1x1x1xf32>
    %cst_12 = arith.constant 1.000000e+00 : f32
    %30 = arith.divf %cst_12, %29 : f32
    %31 = vector.broadcast %30 : f32 to vector<1x1xf32>
    %c0_13 = arith.constant 0 : index
    %c0_14 = arith.constant 0 : index
    %32 = vector.load %arg2[%c0_13, %c0_14] : memref<1x1xf32, #tpu.memory_space<vmem>>, vector<1x1xf32>
    tpu.vector_store %arg2[%c0_13, %c0_14], %31 {strides = array<i32>} : memref<1x1xf32, #tpu.memory_space<vmem>>, vector<1x1xf32>,
    %c0_15 = arith.constant 0 : index
    %c0_16 = arith.constant 0 : index
    %33 = vector.load %arg3[%c0_15, %c0_16] : memref<1x8xf32, #tpu.memory_space<vmem>>, vector<1x8xf32>
    tpu.vector_store %arg3[%c0_15, %c0_16], %23 {strides = array<i32>} : memref<1x8xf32, #tpu.memory_space<vmem>>, vector<1x8xf32>,
    %c0_17 = arith.constant 0 : index
    %c0_18 = arith.constant 0 : index
    %34 = vector.load %arg4[%c0_17, %c0_18] : memref<1x36xf32, #tpu.memory_space<vmem>>, vector<1x36xf32>
    tpu.vector_store %arg4[%c0_17, %c0_18], %12 {strides = array<i32>} : memref<1x36xf32, #tpu.memory_space<vmem>>, vector<1x36xf32>,
    return
  }
}

</mosaic_0001>

<bundles_post_ra>
// kernel: tpu_custom_call.1
= control target key start
LH: loop header
LB: loop body
LE: loop exit
PB: predicated region body
PF: predicated region fallthrough
CT: control target
= control target key end

     0   :  { %10 = vsyncpa [#allocation3], 0  ;;  %s567_s0 = inlined_call_operand.hbm [shape: f32[8,36], index: 0, kind: input, shape index: {}]   ;;  %s568_s1 = inlined_call_operand.vmem [shape: f32[1,8], index: 1, kind: input, shape index: {}]   ;;  %s569_s2 = inlined_call_operand.hbm [shape: f32[1,1], index: 2, kind: output, shape index: {0}]   ;;  %s570_s3 = inlined_call_operand.hbm [shape: f32[1,8], index: 3, kind: output, shape index: {1}]   ;;  %s571_s4 = inlined_call_operand.hbm [shape: f32[1,36], index: 4, kind: output, shape index: {2}]  }
   0x1   :  { %11 = vsyncpa [#allocation4], 0 }
   0x2   :  { %12 = vsyncpa [#allocation7], 0  ;;  %s512_s15 = smov [#allocation2]  }
   0x3   :  { %s19_s16 = sshll.u32 %s512_s15, 4  ;;  %s20_s16 = int_to_ptr.vmem [resolvable:$true] %s19_s16 }
   0x4   :  { %s434_s17 = scalar_lea.vmem %s20_s16, 128  ;;  %p439_p1 = scmp.lt.s32.totalorder %s20_s16, %s20_s16 }
   0x5   :  { %p435_p0 = scmp.ne.s32.totalorder %s20_s16, %s434_s17  ;;  %p440_p2 = scmp.lt.s32.totalorder %s434_s17, %s434_s17 }
   0x7   :  { %p441_p3 = por %p440_p2, %p439_p1 }
   0x9   :  { %p442_p4 = pnand %p441_p3, %p435_p0 }
   0xb   :  { %445 = shalt.err (!%p442_p4)
}
   0xc   :  { %22 = dma.hbm_to_vmem [thread:$0]  %s567_s0, 128, %s20_s16, [#allocation3]  }
   0xd   :  { %506 = dma.done.wait [#allocation3], 128  }
   0xe   :  { %507 = vsyncadd [#allocation3], 4294967168  ;;  %v513_v0 = vmov 0.0   ;;  %vm514_vm0 = vmmov 0   ;;  %vm30_vm1 = vcmask 64512   ;;  %v28_v1 = vld [vmem:[#allocation2] sm:$0xff] }
   0xf   :  { %379 = vmatprep.subr.mxu0 %v513_v0  ;;  %381 = vmatprep.mubr.msk.f32.mxu0 %vm514_vm0, %v513_v0  ;;  %v29_v2 = vld [vmem:[%s568_s1] sm:$0x1]  ;;  %vm105_vm2 = vcmask 286720   ;;  %vm131_vm3 = vcmask 293888   ;;  %vm209_vm6 = vcmask 57344   ;;  %s515_s28 = smov [#allocation6]  }
  0x10   :  { %384 = vmatprep.subr.mxu1 %v513_v0  ;;  %386 = vmatprep.mubr.msk.f32.mxu1 %vm514_vm0, %v513_v0  ;;  %s343_s29 = sshll.u32 %s515_s28, 4  ;;  %s344_s29 = int_to_ptr.vmem [resolvable:$true] %s343_s29 }
  0x11   :  { %380 = vmatpush3.msra.mxu0 %v28_v1  ;;  %385 = vmatpush3.xpose.msk.msra.mxu1 %vm131_vm3, %v28_v1  ;;  %s446_s30 = scalar_lea.vmem %s344_s29, 16  ;;  %s450_s5 = scalar_lea.vmem %s344_s29, 32 }
  0x12   :  { %382 = vmatmul.mubr.msk.f32.vlgmr.msra.gmra.mxu0 %vm30_vm1, %v29_v2  ;;  %389 = vmatprep.subr.mxu0 %v513_v0  ;;  %p447_p5 = scmp.ne.s32.totalorder %s344_s29, %s446_s30  ;;  %p451_p6 = scmp.lt.s32.totalorder %s344_s29, %s344_s29 }
  0x13   :  { %390 = vmatpush3.msra.mxu0 %v28_v1  ;;  %391 = vmatprep.mubr.msk.f32.mxu0 %vm514_vm0, %v513_v0  ;;  %p452_p7 = scmp.lt.s32.totalorder %s450_s5, %s446_s30 }
  0x15   :  { %p453_p8 = por %p452_p7, %p451_p6 }
  0x17   :  { %p454_p9 = pnand %p453_p8, %p447_p5 }
  0xd2   :  { %v100_v3 = vpop.f32.mrf.mxu0 }
  0xd3   :  { %v104_v4 = vmul.f32 %v100_v3, %v100_v3 }
  0xd4   :  { %v383_v5 = vpop.f32.mrf.mxu0 }
  0xd5   :  { %v106_v6 = vsel %vm105_vm2, %v104_v4, 0.0 }
  0xd6   :  { %107 = vadd.xlane.f32.xlu0 %v106_v6 }
 0x15f   :  { %v108_v7 = vpop.xlane.xlu0 %107 }
 0x160   :  { %v109_v8 = vrot.slane %v108_v7, 4 }
 0x162   :  { %v110_v9 = vadd.f32 %v109_v8, %v108_v7 }
 0x164   :  { %v111_v10 = vrot.slane %v110_v9, 2 }
 0x166   :  { %v112_v11 = vadd.f32 %v111_v10, %v110_v9 }
 0x168   :  { %v113_v12 = vrot.slane %v112_v11, 1 }
 0x16a   :  { %v114_v13 = vadd.f32 %v113_v12, %v112_v11 }
 0x16c   :  { %394 = vpush %v114_v13 }
 0x19d   :  { %s395_s0 = spop %394 }
 0x19e   :  { %v116_v14 = vstv %s395_s0 }
 0x19f   :  { %416 = vrsqrt.f32 %v116_v14  ;;  %vm119_vm4 = vcmp.eq.f32.partialorder %v116_v14, inf  ;;  %v122_v17 = vand.u32 2147483648, %v116_v14  ;;  %vm121_vm5 = vcmp.eq.f32.partialorder %v116_v14, 0.0 }
 0x1ac   :  { %v417_v15 = vpop.eup %416 }
 0x1ad   :  { %v118_v16 = vmul.f32 %v417_v15, %v116_v14 }
 0x1af   :  { %v120_v18 = vsel %vm119_vm4, %v116_v14, %v118_v16 }
 0x1b0   :  { %v123_v19 = vsel %vm121_vm5, %v122_v17, %v120_v18 }
 0x1b1   :  { %396 = vpush %v123_v19 }
 0x1e2   :  { %s397_s1 = spop %396 }
 0x1e3   :  { %s125_s22 = sadd.f32 1e-12, %s397_s1 }
 0x1e5   :  { %v126_v20 = vstv %s125_s22 }
 0x1e6   :  { %418 = vrcp.f32 %v126_v20 }
 0x1f3   :  { %v419_v21 = vpop.eup %418 }
 0x1f4   :  { %398 = vpush %v419_v21 }
 0x225   :  { %s399_s23 = spop %398 }
 0x226   :  { %v129_v22 = vstv %s399_s23 }
 0x227   :  { %v130_v23 = vmul.f32 %v129_v22, %v100_v3 }
 0x229   :  { %326 = vst.msk [vmem:[#allocation8] sm:$0x1] %vm105_vm2, %v130_v23  ;;  %387 = vmatmul.mubr.msk.f32.vlgmr.msra.gmra.mxu1 %vm131_vm3, %v130_v23 }
 0x2e9   :  { %v204_v24 = vpop.f32.mrf.mxu1 }
 0x2ea   :  { %v208_v25 = vmul.f32 %v204_v24, %v204_v24 }
 0x2eb   :  { %v388_v26 = vpop.f32.mrf.mxu1 }
 0x2ec   :  { %v210_v27 = vsel %vm209_vm6, %v208_v25, 0.0 }
 0x2ed   :  { %211 = vadd.xlane.f32.xlu0 %v210_v27 }
 0x376   :  { %v212_v28 = vpop.xlane.xlu0 %211 }
 0x377   :  { %v213_v29 = vrot.slane %v212_v28, 4 }
 0x379   :  { %v214_v30 = vadd.f32 %v213_v29, %v212_v28 }
 0x37b   :  { %v215_v31 = vrot.slane %v214_v30, 2 }
 0x37d   :  { %v216_v32 = vadd.f32 %v215_v31, %v214_v30 }
 0x37f   :  { %v217_v33 = vrot.slane %v216_v32, 1 }
 0x381   :  { %v218_v34 = vadd.f32 %v217_v33, %v216_v32 }
 0x383   :  { %400 = vpush %v218_v34 }
 0x3b4   :  { %s401_s24 = spop %400 }
 0x3b5   :  { %v220_v35 = vstv %s401_s24 }
 0x3b6   :  { %420 = vrsqrt.f32 %v220_v35  ;;  %vm223_vm7 = vcmp.eq.f32.partialorder %v220_v35, inf  ;;  %v226_v38 = vand.u32 2147483648, %v220_v35  ;;  %vm225_vm8 = vcmp.eq.f32.partialorder %v220_v35, 0.0 }
 0x3c3   :  { %v421_v36 = vpop.eup %420 }
 0x3c4   :  { %v222_v37 = vmul.f32 %v421_v36, %v220_v35 }
 0x3c6   :  { %v224_v39 = vsel %vm223_vm7, %v220_v35, %v222_v37 }
 0x3c7   :  { %v227_v40 = vsel %vm225_vm8, %v226_v38, %v224_v39 }
 0x3c8   :  { %402 = vpush %v227_v40 }
 0x3f9   :  { %s403_s25 = spop %402 }
 0x3fa   :  { %s229_s26 = sadd.f32 1e-12, %s403_s25 }
 0x3fc   :  { %v230_v41 = vstv %s229_s26 }
 0x3fd   :  { %422 = vrcp.f32 %v230_v41 }
 0x40a   :  { %v423_v42 = vpop.eup %422 }
 0x40b   :  { %404 = vpush %v423_v42 }
 0x43c   :  { %s405_s27 = spop %404 }
 0x43d   :  { %v233_v43 = vstv %s405_s27 }
 0x43e   :  { %v234_v44 = vmul.f32 %v233_v43, %v204_v24 }
 0x440   :  { %325 = vst.msk [vmem:[#allocation6] sm:$0x1] %vm209_vm6, %v234_v44  ;;  %392 = vmatmul.mubr.msk.f32.vlgmr.msra.gmra.mxu0 %vm30_vm1, %v234_v44 }
 0x500   :  { %v304_v45 = vpop.f32.mrf.mxu0 }
 0x501   :  { %v308_v46 = vmul.f32 %v304_v45, %v130_v23 }
 0x502   :  { %v393_v47 = vpop.f32.mrf.mxu0 }
 0x503   :  { %v309_v48 = vsel %vm105_vm2, %v308_v46, 0.0 }
 0x504   :  { %310 = vadd.xlane.f32.xlu1 %v309_v48 }
 0x58d   :  { %v311_v49 = vpop.xlane.xlu1 %310 }
 0x58e   :  { %v312_v50 = vrot.slane %v311_v49, 4 }
 0x58f   :  { %457 = shalt.err (!%p454_p9)
}
 0x590   :  { %346 = dma.vmem_to_hbm [thread:$0]  %s344_s29, 16, %s570_s3, [#allocation7]   ;;  %v313_v51 = vadd.f32 %v312_v50, %v311_v49 }
 0x591   :  { %s516_s8 = smov [#allocation8]  }
 0x592   :  { %s353_s9 = sshll.u32 %s516_s8, 4  ;;  %v314_v52 = vrot.slane %v313_v51, 2  ;;  %s354_s9 = int_to_ptr.vmem [resolvable:$true] %s353_s9 }
 0x593   :  { %s466_s10 = scalar_lea.vmem %s354_s9, 16  ;;  %s470_s11 = scalar_lea.vmem %s354_s9, 32 }
 0x594   :  { %p467_p10 = scmp.ne.s32.totalorder %s354_s9, %s466_s10  ;;  %p471_p11 = scmp.lt.s32.totalorder %s354_s9, %s354_s9 }
 0x595   :  { %p472_p12 = scmp.lt.s32.totalorder %s470_s11, %s466_s10 }
 0x597   :  { %p473_p13 = por %p472_p12, %p471_p11 }
 0x599   :  { %p474_p0 = pnand %p473_p13, %p467_p10 }
 0x59b   :  { %477 = shalt.err (!%p474_p0)
}
 0x59c   :  { %356 = dma.vmem_to_hbm [thread:$0]  %s354_s9, 16, %s571_s4, [#allocation7]   ;;  %v315_v53 = vadd.f32 %v314_v52, %v313_v51  ;;  %vm323_vm9 = vcmask 0  }
 0x59d   :  { %s517_s14 = smov [#allocation5]  }
 0x59e   :  { %v316_v54 = vrot.slane %v315_v53, 1  ;;  %s333_s15 = sshll.u32 %s517_s14, 4  ;;  %s334_s15 = int_to_ptr.vmem [resolvable:$true] %s333_s15 }
 0x59f   :  { %s486_s17 = scalar_lea.vmem %s334_s15, 16  ;;  %s490_s18 = scalar_lea.vmem %s334_s15, 32 }
 0x5a0   :  { %v317_v55 = vadd.f32 %v316_v54, %v315_v53  ;;  %p487_p1 = scmp.ne.s32.totalorder %s334_s15, %s486_s17  ;;  %p491_p2 = scmp.lt.s32.totalorder %s334_s15, %s334_s15 }
 0x5a1   :  { %p492_p3 = scmp.lt.s32.totalorder %s490_s18, %s486_s17 }
 0x5a2   :  { %406 = vpush %v317_v55 }
 0x5a3   :  { %p493_p4 = por %p492_p3, %p491_p2 }
 0x5a5   :  { %p494_p5 = pnand %p493_p4, %p487_p1 }
 0x5d3   :  { %s407_s3 = spop %406 }
 0x5d4   :  { %v319_v56 = vstv %s407_s3 }
 0x5d5   :  { %424 = vrcp.f32 %v319_v56 }
 0x5e2   :  { %v425_v57 = vpop.eup %424 }
 0x5e3   :  { %408 = vpush %v425_v57 }
 0x614   :  { %s409_s16 = spop %408 }
 0x615   :  { %v322_v58 = vstv %s409_s16 }
 0x616   :  { %324 = vst.msk [vmem:[#allocation5] sm:$0x1] %vm323_vm9, %v322_v58 }
 0x617   :  { %497 = shalt.err (!%p494_p5)
}
 0x618   :  { %336 = dma.vmem_to_hbm [thread:$0]  %s334_s15, 16, %s569_s2, [#allocation4]  }
 0x619   :  { %508 = dma.done.wait [#allocation4], 16  }
 0x61a   :  { %509 = vsyncadd [#allocation4], 4294967280 }
 0x61b   :  { %510 = dma.done.wait [#allocation7], 32  }
 0x61c   :  { %511 = vsyncadd [#allocation7], 4294967264 }
 0x61d   :  { %366 = vsyncpa [#allocation3], 1 }
 0x61e   :  { %367 = vsyncpa [#allocation4], 1 }
 0x61f   :  { %368 = vsyncpa [#allocation7], 1 }

</bundles_post_ra>
